<compile_context>
chip_gen: v7x
topology: tpu7x:2x2x1
jax: 0.10.0
libtpu: 0.0.40
codegen_flags: <defaults>
</compile_context>

<pallas_src>
import functools

import jax
import jax.numpy as jnp
from jax.experimental import pallas as pl
from jax.experimental.pallas import tpu as pltpu

EPS = 1e-6  # config.epsilon


def _max_margin_kernel(z_s_ref, z_n_ref, r_s_ref, out_ref, *, batch, tile_b):
    i = pl.program_id(0)

    # Upcast at load (inputs may arrive as bf16; all math in f32 — required on v5e,
    # and halving the HBM bytes of z_n is the main bandwidth win if bf16 is used).
    z_s = z_s_ref[...].astype(jnp.float32)          # (TB, D)
    z_n = z_n_ref[...].astype(jnp.float32)          # (TB, NEG, D)
    r_s = r_s_ref[...].astype(jnp.float32)          # (TB, D)

    # Raw (un-normalized) dot products first.
    # NOTE: for large D (>=256) this contraction could go to the MXU via
    # lax.dot_general('bnd,bd->bn'); for small D the VPU+XLU path is cheaper.
    pos_raw = jnp.sum(z_s * r_s, axis=-1, keepdims=True)        # (TB, 1)
    neg_raw = jnp.sum(z_n * r_s[:, None, :], axis=-1)           # (TB, NEG)

    # Norms (eps added to the norm, matching torch.norm(...) + eps).
    zs_n = EPS + jnp.sqrt(jnp.sum(z_s * z_s, axis=-1, keepdims=True))   # (TB, 1)
    rs_n = EPS + jnp.sqrt(jnp.sum(r_s * r_s, axis=-1, keepdims=True))   # (TB, 1)
    zn_n = EPS + jnp.sqrt(jnp.sum(z_n * z_n, axis=-1))                  # (TB, NEG)

    # Normalize AFTER the contraction: divides only on tiny shapes.
    # (approx=True would push the reciprocal to the EUP slot; kept exact here to
    #  preserve 1e-6-level agreement with the reference.)
    pos = pos_raw * pl.reciprocal(zs_n * rs_n, approx=False)     # (TB, 1)
    neg = neg_raw * pl.reciprocal(zn_n * rs_n, approx=False)     # (TB, NEG)

    hinge = jnp.maximum(0.0, 1.0 - pos + neg)                    # (TB, NEG)

    # Mask padded rows of the last (partial) batch tile, if any (static check).
    if batch % tile_b != 0:
        row = i * tile_b + jax.lax.broadcasted_iota(jnp.int32, (tile_b, 1), 0)
        hinge = jnp.where(row < batch, hinge, 0.0)

    # Lane-dense write of this tile's partial sum (full (1, 8, 128) block).
    out_ref[...] = jnp.full(out_ref.shape, jnp.sum(hinge), dtype=jnp.float32)


def max_margin(z_s, z_n, r_s):
    """z_s: (B, D), z_n: (B, NEG, D), r_s: (B, D) -> scalar float32 loss."""
    B, D = z_s.shape
    _, NEG, _ = z_n.shape

    # Batch tile: largest multiple of 8 whose (double-buffered) z_n block stays well
    # under the default scoped-VMEM budget on all generations (16 MiB on v5e,
    # 32 MiB on v6e/v7x): target ~4 MiB per z_n block.
    itemsize = jnp.dtype(z_n.dtype).itemsize
    row_bytes = (NEG + 2) * D * itemsize               # z_n + z_s + r_s per batch row
    target_block_bytes = 4 * 1024 * 1024
    if B <= 8:
        tb = B                                         # block == full dim is allowed
    else:
        cap = (B // 8) * 8
        tb = max(8, min((target_block_bytes // max(row_bytes, 1)) // 8 * 8, cap))
    grid = pl.cdiv(B, tb)

    kernel = functools.partial(_max_margin_kernel, batch=B, tile_b=tb)

    partials = pl.pallas_call(
        kernel,
        out_shape=jax.ShapeDtypeStruct((grid, 8, 128), jnp.float32),
        grid_spec=pltpu.PrefetchScalarGridSpec(
            num_scalar_prefetch=0,
            grid=(grid,),
            in_specs=[
                pl.BlockSpec((tb, D), lambda i: (i, 0)),
                pl.BlockSpec((tb, NEG, D), lambda i: (i, 0, 0)),
                pl.BlockSpec((tb, D), lambda i: (i, 0)),
            ],
            out_specs=pl.BlockSpec((1, 8, 128), lambda i: (i, 0, 0)),
        ),
        compiler_params=pltpu.CompilerParams(
            dimension_semantics=("parallel",),   # shards tiles across both v7x TCs
        ),
    )(z_s, z_n, r_s)

    # Per-tile partial sums -> scalar (tiny XLA reduce in the wrapper).
    return jnp.sum(partials[:, 0, 0])


def max_margin_ref(z_s, z_n, r_s, eps=EPS):
    """Pure-JAX reference mirroring the PyTorch forward."""
    z_s = z_s / (eps + jnp.linalg.norm(z_s, axis=-1, keepdims=True))
    z_n = z_n / (eps + jnp.linalg.norm(z_n, axis=-1, keepdims=True))
    r_s = r_s / (eps + jnp.linalg.norm(r_s, axis=-1, keepdims=True))
    z_s = z_s.astype(jnp.float32)
    z_n = z_n.astype(jnp.float32)
    r_s = r_s.astype(jnp.float32)
    pos = jnp.sum(z_s * r_s, axis=-1)[:, None]                # (B, 1)
    neg = jnp.sum(z_n * r_s[:, None, :], axis=-1)             # (B, NEG)
    loss = jnp.sum(jnp.maximum(0.0, 1.0 - pos + neg), axis=-1)
    return jnp.sum(loss, axis=0)


if __name__ == "__main__":
    B, NEG, D = 8, 8, 32  # config.batch_size, config.neg_size, hidden

    key = jax.random.PRNGKey(0)
    k1, k2, k3 = jax.random.split(key, 3)
    z_s = jax.random.normal(k1, (B, D), dtype=jnp.float32)
    z_n = jax.random.normal(k2, (B, NEG, D), dtype=jnp.float32)
    r_s = jax.random.normal(k3, (B, D), dtype=jnp.float32)

    loss = jax.block_until_ready(max_margin(z_s, z_n, r_s))
    ref = jax.block_until_ready(max_margin_ref(z_s, z_n, r_s))

    assert jnp.allclose(loss, ref, rtol=1e-5, atol=1e-5), (loss, ref)
    print("KERNEL_OK")
</pallas_src>

<mosaic_0001>
module attributes {stable_mosaic.version = 11 : i64} {
  func.func @_max_margin_kernel(%arg0: i32, %arg1: memref<8x32xf32, #tpu.memory_space<vmem>>, %arg2: memref<8x8x32xf32, #tpu.memory_space<vmem>>, %arg3: memref<8x32xf32, #tpu.memory_space<vmem>>, %arg4: memref<1x8x128xf32, #tpu.memory_space<vmem>>) attributes {dimension_semantics = [#tpu.dimension_semantics<parallel>], iteration_bounds = array<i64: 1>, scalar_prefetch = 0 : i64, scratch_operands = 0 : i64, tpu.core_type = #tpu.core_type<tc>, window_params = [{transform_indices = @transform_0, window_bounds = array<i64: 8, 32>}, {transform_indices = @transform_1, window_bounds = array<i64: 8, 8, 32>}, {transform_indices = @transform_2, window_bounds = array<i64: 8, 32>}, {transform_indices = @transform_3, window_bounds = array<i64: 1, 8, 128>}]} {
    %c0 = arith.constant 0 : index
    %c0_0 = arith.constant 0 : index
    %0 = vector.load %arg1[%c0, %c0_0] : memref<8x32xf32, #tpu.memory_space<vmem>>, vector<8x32xf32>
    %c0_1 = arith.constant 0 : index
    %c0_2 = arith.constant 0 : index
    %c0_3 = arith.constant 0 : index
    %1 = vector.load %arg2[%c0_1, %c0_2, %c0_3] : memref<8x8x32xf32, #tpu.memory_space<vmem>>, vector<8x8x32xf32>
    %c0_4 = arith.constant 0 : index
    %c0_5 = arith.constant 0 : index
    %2 = vector.load %arg3[%c0_4, %c0_5] : memref<8x32xf32, #tpu.memory_space<vmem>>, vector<8x32xf32>
    %3 = arith.mulf %0, %2 : vector<8x32xf32>
    %cst = arith.constant dense<0.000000e+00> : vector<8xf32>
    %4 = vector.multi_reduction <add>, %3, %cst [1] : vector<8x32xf32> to vector<8xf32>
    %5 = vector.shape_cast %4 : vector<8xf32> to vector<8x1xf32>
    %6 = vector.shape_cast %2 : vector<8x32xf32> to vector<8x1x32xf32>
    %7 = vector.broadcast %6 : vector<8x1x32xf32> to vector<8x8x32xf32>
    %8 = arith.mulf %1, %7 : vector<8x8x32xf32>
    %cst_6 = arith.constant dense<0.000000e+00> : vector<8x8xf32>
    %9 = vector.multi_reduction <add>, %8, %cst_6 [2] : vector<8x8x32xf32> to vector<8x8xf32>
    %10 = arith.mulf %0, %0 : vector<8x32xf32>
    %cst_7 = arith.constant dense<0.000000e+00> : vector<8xf32>
    %11 = vector.multi_reduction <add>, %10, %cst_7 [1] : vector<8x32xf32> to vector<8xf32>
    %12 = vector.shape_cast %11 : vector<8xf32> to vector<8x1xf32>
    %13 = math.sqrt %12 : vector<8x1xf32>
    %cst_8 = arith.constant 9.99999997E-7 : f32
    %14 = vector.broadcast %cst_8 : f32 to vector<8x1xf32>
    %15 = arith.addf %14, %13 : vector<8x1xf32>
    %16 = arith.mulf %2, %2 : vector<8x32xf32>
    %cst_9 = arith.constant dense<0.000000e+00> : vector<8xf32>
    %17 = vector.multi_reduction <add>, %16, %cst_9 [1] : vector<8x32xf32> to vector<8xf32>
    %18 = vector.shape_cast %17 : vector<8xf32> to vector<8x1xf32>
    %19 = math.sqrt %18 : vector<8x1xf32>
    %cst_10 = arith.constant 9.99999997E-7 : f32
    %20 = vector.broadcast %cst_10 : f32 to vector<8x1xf32>
    %21 = arith.addf %20, %19 : vector<8x1xf32>
    %22 = arith.mulf %1, %1 : vector<8x8x32xf32>
    %cst_11 = arith.constant dense<0.000000e+00> : vector<8x8xf32>
    %23 = vector.multi_reduction <add>, %22, %cst_11 [2] : vector<8x8x32xf32> to vector<8x8xf32>
    %24 = math.sqrt %23 : vector<8x8xf32>
    %cst_12 = arith.constant 9.99999997E-7 : f32
    %25 = vector.broadcast %cst_12 : f32 to vector<8x8xf32>
    %26 = arith.addf %25, %24 : vector<8x8xf32>
    %27 = arith.mulf %15, %21 : vector<8x1xf32>
    %28 = tpu.reciprocal %27 : vector<8x1xf32> -> vector<8x1xf32>
    %29 = arith.mulf %5, %28 : vector<8x1xf32>
    %30 = vector.broadcast %21 : vector<8x1xf32> to vector<8x8xf32>
    %31 = arith.mulf %26, %30 : vector<8x8xf32>
    %32 = tpu.reciprocal %31 : vector<8x8xf32> -> vector<8x8xf32>
    %33 = arith.mulf %9, %32 : vector<8x8xf32>
    %cst_13 = arith.constant 1.000000e+00 : f32
    %34 = vector.broadcast %cst_13 : f32 to vector<8x1xf32>
    %35 = arith.subf %34, %29 : vector<8x1xf32>
    %36 = vector.broadcast %35 : vector<8x1xf32> to vector<8x8xf32>
    %37 = arith.addf %36, %33 : vector<8x8xf32>
    %cst_14 = arith.constant 0.000000e+00 : f32
    %38 = vector.broadcast %cst_14 : f32 to vector<8x8xf32>
    %39 = arith.maximumf %38, %37 : vector<8x8xf32>
    %40 = vector.shape_cast %39 : vector<8x8xf32> to vector<1x8x8xf32>
    %cst_15 = arith.constant dense<0.000000e+00> : vector<1xf32>
    %41 = vector.multi_reduction <add>, %40, %cst_15 [1, 2] : vector<1x8x8xf32> to vector<1xf32>
    %42 = vector.shape_cast %41 : vector<1xf32> to vector<1x1x1xf32>
    %43 = vector.extract %42[0, 0, 0] : f32 from vector<1x1x1xf32>
    %44 = vector.broadcast %43 : f32 to vector<1x8x128xf32>
    %c0_16 = arith.constant 0 : index
    %c0_17 = arith.constant 0 : index
    %c0_18 = arith.constant 0 : index
    %45 = vector.load %arg4[%c0_16, %c0_17, %c0_18] : memref<1x8x128xf32, #tpu.memory_space<vmem>>, vector<1x8x128xf32>
    tpu.vector_store %arg4[%c0_16, %c0_17, %c0_18], %44 {strides = array<i32>} : memref<1x8x128xf32, #tpu.memory_space<vmem>>, vector<1x8x128xf32>,
    return
  }
  func.func @transform_0(%arg0: i32) -> (i32, i32) {
    %c0_i32 = arith.constant 0 : i32
    %c0_i32_0 = arith.constant 0 : i32
    return %arg0, %c0_i32 : i32, i32
  }
  func.func @transform_1(%arg0: i32) -> (i32, i32, i32) {
    %c0_i32 = arith.constant 0 : i32
    %c0_i32_0 = arith.constant 0 : i32
    %c0_i32_1 = arith.constant 0 : i32
    return %arg0, %c0_i32, %c0_i32_0 : i32, i32, i32
  }
  func.func @transform_2(%arg0: i32) -> (i32, i32) {
    %c0_i32 = arith.constant 0 : i32
    %c0_i32_0 = arith.constant 0 : i32
    return %arg0, %c0_i32 : i32, i32
  }
  func.func @transform_3(%arg0: i32) -> (i32, i32, i32) {
    %c0_i32 = arith.constant 0 : i32
    %c0_i32_0 = arith.constant 0 : i32
    %c0_i32_1 = arith.constant 0 : i32
    return %arg0, %c0_i32, %c0_i32_0 : i32, i32, i32
  }
}

</mosaic_0001>

<bundles_post_ra>
// kernel: tpu_custom_call.1
= control target key start
LH: loop header
LB: loop body
LE: loop exit
PB: predicated region body
PF: predicated region fallthrough
CT: control target
= control target key end

     0   :  { %8 = vsyncpa [#allocation3], 0  ;;  %s824_s0 = inlined_call_operand.hbm [shape: f32[8,32], index: 0, kind: input, shape index: {}]   ;;  %s825_s1 = inlined_call_operand.hbm [shape: f32[8,8,32], index: 1, kind: input, shape index: {}]   ;;  %s826_s2 = inlined_call_operand.hbm [shape: f32[8,32], index: 2, kind: input, shape index: {}]   ;;  %s827_s3 = inlined_call_operand.hbm [shape: f32[1,8,128], index: 3, kind: output, shape index: {}]  }
   0x1   :  { %9 = vsyncpa [#allocation6], 0 }
   0x2   :  { %10 = vsyncpa [#allocation4], 0  ;;  %s635_s12 = smov [#allocation5]   ;;  %s541_s16 = scalar_lea.hbm %s825_s1, 1024 }
   0x3   :  { %s26_s13 = sshll.u32 %s635_s12, 4  ;;  %p542_p0 = scmp.ne.s32.totalorder %s825_s1, %s541_s16  ;;  %s27_s13 = int_to_ptr.vmem [resolvable:$true] %s26_s13 }
   0x4   :  { %p545_p1 = scmp.lt.u32.totalorder %s541_s16, %s825_s1 }
   0x6   :  { %p547_p2 = pnand %p545_p1, %p542_p0 }
   0x8   :  { %550 = shalt.err (!%p547_p2)
}
   0x9   :  { %s551_s21 = scalar_lea.vmem %s27_s13, 1024  ;;  %p556_p4 = scmp.lt.s32.totalorder %s27_s13, %s27_s13 }
   0xa   :  { %p552_p3 = scmp.ne.s32.totalorder %s27_s13, %s551_s21  ;;  %p557_p5 = scmp.lt.s32.totalorder %s551_s21, %s551_s21 }
   0xc   :  { %p558_p6 = por %p557_p5, %p556_p4 }
   0xe   :  { %p559_p7 = pnand %p558_p6, %p552_p3 }
  0x10   :  { %562 = shalt.err (!%p559_p7)
}
  0x11   :  { %s636_s22 = smov 128   ;;  %s637_s23 = smov 8  }
  0x12   :  { %32 = dma.hbm_to_vmem [thread:$0]  %s825_s1, 1024, %s27_s13, [#allocation6], %s636_s22, %s636_s22, %s637_s23  }
  0x13   :  { %s638_s26 = smov [#allocation2]   ;;  %s639_s28 = smov [#allocation7]  }
  0x14   :  { %s17_s27 = sshll.u32 %s638_s26, 4  ;;  %s39_s29 = sshll.u32 %s639_s28, 4  ;;  %s18_s27 = int_to_ptr.vmem [resolvable:$true] %s17_s27  ;;  %s40_s29 = int_to_ptr.vmem [resolvable:$true] %s39_s29 }
  0x15   :  { %s563_s5 = scalar_lea.hbm %s824_s0, 128 }
  0x16   :  { %p564_p8 = scmp.ne.s32.totalorder %s824_s0, %s563_s5  ;;  %p567_p9 = scmp.lt.u32.totalorder %s563_s5, %s824_s0 }
  0x18   :  { %p569_p10 = pnand %p567_p9, %p564_p8 }
  0x1a   :  { %572 = shalt.err (!%p569_p10)
}
  0x1b   :  { %s573_s1 = scalar_lea.vmem %s18_s27, 128  ;;  %p578_p12 = scmp.lt.s32.totalorder %s18_s27, %s18_s27 }
  0x1c   :  { %p574_p11 = scmp.ne.s32.totalorder %s18_s27, %s573_s1  ;;  %p579_p13 = scmp.lt.s32.totalorder %s573_s1, %s573_s1 }
  0x1e   :  { %p580_p0 = por %p579_p13, %p578_p12 }
  0x20   :  { %p581_p1 = pnand %p580_p0, %p574_p11 }
  0x22   :  { %584 = shalt.err (!%p581_p1)
}
  0x23   :  { %20 = dma.hbm_to_vmem [thread:$0]  %s824_s0, 128, %s18_s27, [#allocation3]  }
  0x24   :  { %s585_s14 = scalar_lea.hbm %s826_s2, 128 }
  0x25   :  { %p586_p2 = scmp.ne.s32.totalorder %s826_s2, %s585_s14  ;;  %p589_p3 = scmp.lt.u32.totalorder %s585_s14, %s826_s2 }
  0x27   :  { %p591_p4 = pnand %p589_p3, %p586_p2 }
  0x29   :  { %594 = shalt.err (!%p591_p4)
}
  0x2a   :  { %s595_s19 = scalar_lea.vmem %s40_s29, 128  ;;  %p600_p6 = scmp.lt.s32.totalorder %s40_s29, %s40_s29 }
  0x2b   :  { %p596_p5 = scmp.ne.s32.totalorder %s40_s29, %s595_s19  ;;  %p601_p7 = scmp.lt.s32.totalorder %s595_s19, %s595_s19 }
  0x2d   :  { %p602_p8 = por %p601_p7, %p600_p6 }
  0x2f   :  { %p603_p9 = pnand %p602_p8, %p596_p5 }
  0x31   :  { %606 = shalt.err (!%p603_p9)
}
  0x32   :  { %42 = dma.hbm_to_vmem [thread:$0]  %s826_s2, 128, %s40_s29, [#allocation6]  }
  0x33   :  { %629 = dma.done.wait [#allocation3], 128  }
  0x34   :  { %630 = vsyncadd [#allocation3], 4294967168 }
  0x35   :  { %631 = dma.done.wait [#allocation6], 1152  }
  0x36   :  { %632 = vsyncadd [#allocation6], 4294966144  ;;  %v72_v0 = vlaneseq  ;;  %v640_v1 = vmov 1966171168   ;;  %v703_v6 = vld [vmem:[#allocation7] sm:$0xff]  ;;  %vm63_vm0 = vcmask 261120  }
  0x37   :  { %v70_v2 = vunpack.c.l.s4 %v640_v1  ;;  %v54_v7 = vld [vmem:[#allocation5 + $0x8] sm:$0xff]  ;;  %v55_v8 = vld [vmem:[#allocation5 + $0x10] sm:$0xff]  ;;  %v201_v9 = vmul.f32 %v703_v6, %v703_v6  ;;  %v53_v12 = vld [vmem:[#allocation5] sm:$0xff]  ;;  %v68_v19 = vcombine.high %v703_v6, %v703_v6  ;;  %s642_s2 = smov [#allocation8]  }
  0x38   :  { %v700_v3 = vshrl.u32 %v72_v0, 7  ;;  %v214_v10 = vmul.f32 %v54_v7, %v54_v7  ;;  %v215_v11 = vmul.f32 %v55_v8, %v55_v8  ;;  %v57_v13 = vld [vmem:[#allocation5 + $0x20] sm:$0xff]  ;;  %v213_v14 = vmul.f32 %v53_v12, %v53_v12  ;;  %v56_v15 = vld [vmem:[#allocation5 + $0x18] sm:$0xff]  ;;  %v59_v21 = vld [vmem:[#allocation5 + $0x30] sm:$0xff]  ;;  %s480_s21 = sshll.u32 %s642_s2, 4  ;;  %s481_s21 = int_to_ptr.vmem [resolvable:$true] %s480_s21 }
  0x39   :  { %v71_v4 = vunpack.c.0.s8 %v70_v2  ;;  %v202_v17 = vsel %vm63_vm0, %v201_v9, 0.0  ;;  %v217_v20 = vmul.f32 %v57_v13, %v57_v13  ;;  %v216_v25 = vmul.f32 %v56_v15, %v56_v15  ;;  %v58_v26 = vld [vmem:[#allocation5 + $0x28] sm:$0xff]  ;;  %v60_v34 = vld [vmem:[#allocation5 + $0x38] sm:$0xff]  ;;  %s607_s23 = scalar_lea.vmem %s481_s21, 128  ;;  %p612_p11 = scmp.lt.s32.totalorder %s481_s21, %s481_s21 }
  0x3a   :  { %v224_v18 = vsel %vm63_vm0, %v214_v10, 0.0  ;;  %203 = vadd.xlane.f32.xlu0 %v202_v17  ;;  %v713_v22 = vsub.s32 0, %v700_v3  ;;  %v227_v23 = vsel %vm63_vm0, %v215_v11, 0.0  ;;  %v221_v24 = vsel %vm63_vm0, %v213_v14, 0.0  ;;  %p608_p10 = scmp.ne.s32.totalorder %s481_s21, %s607_s23  ;;  %p613_p12 = scmp.lt.s32.totalorder %s607_s23, %s607_s23 }
  0x3b   :  { %v74_v5 = vsub.s32 %v71_v4, %v700_v3  ;;  %225 = vadd.xlane.f32.xlu1 %v224_v18  ;;  %v219_v29 = vmul.f32 %v59_v21, %v59_v21  ;;  %v233_v30 = vsel %vm63_vm0, %v217_v20, 0.0  ;;  %v218_v31 = vmul.f32 %v58_v26, %v58_v26 }
  0x3c   :  { %v230_v33 = vsel %vm63_vm0, %v216_v25, 0.0  ;;  %v220_v40 = vmul.f32 %v60_v34, %v60_v34  ;;  %v319_v25 = vsub.s32 1, %v700_v3  ;;  %p614_p13 = por %p613_p12, %p612_p11 }
  0x3d   :  { %v75_v16 = vrot.slane %v703_v6, %v74_v5  ;;  %v82_v32 = vrot.slane %v68_v19, %v74_v5  ;;  %v239_v38 = vsel %vm63_vm0, %v219_v29, 0.0  ;;  %v236_v39 = vsel %vm63_vm0, %v218_v31, 0.0 }
  0x3e   :  { %222 = vadd.xlane.f32.xlu0 %v221_v24  ;;  %v242_v47 = vsel %vm63_vm0, %v220_v40, 0.0  ;;  %v331_v24 = vsub.s32 4, %v700_v3  ;;  %p615_p0 = pnand %p614_p13, %p608_p10 }
  0x3f   :  { %v91_v27 = vrot.slane %v75_v16, %v74_v5  ;;  %v83_v28 = vcombine.high %v75_v16, %v75_v16  ;;  %228 = vadd.xlane.f32.xlu1 %v227_v23  ;;  %v98_v41 = vrot.slane %v82_v32, %v74_v5  ;;  %v84_v42 = vcombine.high %v82_v32, %v82_v32 }
  0x40   :  { %v323_v23 = vsub.s32 2, %v700_v3 }
  0x41   :  { %v120_v35 = vrot.slane %v91_v27, %v713_v22  ;;  %v113_v36 = vcombine.high %v91_v27, %v91_v27  ;;  %v105_v37 = vrot.slane %v83_v28, %v74_v5  ;;  %v136_v48 = vrot.slane %v98_v41, %v713_v22 }
  0x42   :  { %231 = vadd.xlane.f32.xlu0 %v230_v33  ;;  %v114_v49 = vcombine.high %v98_v41, %v98_v41  ;;  %v112_v50 = vrot.slane %v84_v42, %v74_v5  ;;  %v52_v5 = vld [vmem:[#allocation2] sm:$0xff] }
  0x43   :  { %234 = vadd.xlane.f32.xlu1 %v233_v30  ;;  %v157_v43 = vmul.f32 %v120_v35, %v53_v12  ;;  %v128_v44 = vrot.slane %v113_v36, %v713_v22  ;;  %v124_v45 = vrot.slane %v105_v37, %v713_v22  ;;  %v115_v46 = vcombine.high %v105_v37, %v105_v37 }
  0x44   :  { %v161_v55 = vmul.f32 %v136_v48, %v57_v13  ;;  %v144_v56 = vrot.slane %v114_v49, %v713_v22  ;;  %v140_v57 = vrot.slane %v112_v50, %v713_v22  ;;  %v116_v61 = vcombine.high %v112_v50, %v112_v50 }
  0x45   :  { %v165_v51 = vsel %vm63_vm0, %v157_v43, 0.0  ;;  %v159_v52 = vmul.f32 %v128_v44, %v55_v8  ;;  %v158_v53 = vmul.f32 %v124_v45, %v54_v7  ;;  %v132_v54 = vrot.slane %v115_v46, %v713_v22 }
  0x46   :  { %237 = vadd.xlane.f32.xlu0 %v236_v39  ;;  %v177_v62 = vsel %vm63_vm0, %v161_v55, 0.0  ;;  %v163_v63 = vmul.f32 %v144_v56, %v59_v21  ;;  %v162_v2 = vmul.f32 %v140_v57, %v58_v26  ;;  %v148_v4 = vrot.slane %v116_v61, %v713_v22 }
  0x47   :  { %240 = vadd.xlane.f32.xlu1 %v239_v38  ;;  %v171_v58 = vsel %vm63_vm0, %v159_v52, 0.0  ;;  %v168_v59 = vsel %vm63_vm0, %v158_v53, 0.0  ;;  %v160_v60 = vmul.f32 %v132_v54, %v56_v15  ;;  %v189_v8 = vmul.f32 %v52_v5, %v52_v5 }
  0x48   :  { %v183_v7 = vsel %vm63_vm0, %v163_v63, 0.0  ;;  %v180_v9 = vsel %vm63_vm0, %v162_v2, 0.0  ;;  %v164_v10 = vmul.f32 %v148_v4, %v60_v34  ;;  %v62_v13 = vmul.f32 %v703_v6, %v52_v5 }
  0x49   :  { %v174_v1 = vsel %vm63_vm0, %v160_v60, 0.0  ;;  %v190_v11 = vsel %vm63_vm0, %v189_v8, 0.0  ;;  %v641_v15 = vmov 0   ;;  %v327_v30 = vsub.s32 3, %v700_v3 }
  0x4a   :  { %243 = vadd.xlane.f32.xlu0 %v242_v47  ;;  %v186_v12 = vsel %vm63_vm0, %v164_v10, 0.0  ;;  %v64_v14 = vsel %vm63_vm0, %v62_v13, 0.0  ;;  %500 = vset.pattern.permute.xlu1 %v641_v15 }
  0x4b   :  { %166 = vadd.xlane.f32.xlu1 %v165_v51  ;;  %501 = vset.pattern.permute.xlu0 %v641_v15 }
  0x4e   :  { %169 = vadd.xlane.f32.xlu0 %v168_v59 }
  0x4f   :  { %172 = vadd.xlane.f32.xlu1 %v171_v58 }
  0x52   :  { %175 = vadd.xlane.f32.xlu0 %v174_v1 }
  0x53   :  { %178 = vadd.xlane.f32.xlu1 %v177_v62 }
  0x56   :  { %181 = vadd.xlane.f32.xlu0 %v180_v9 }
  0x57   :  { %184 = vadd.xlane.f32.xlu1 %v183_v7 }
  0x5a   :  { %187 = vadd.xlane.f32.xlu0 %v186_v12 }
  0x5b   :  { %191 = vadd.xlane.f32.xlu1 %v190_v11 }
  0x5e   :  { %65 = vadd.xlane.f32.xlu0 %v64_v14 }
  0xc7   :  { %v204_v16 = vpop.xlane.xlu0 %203 }
  0xc8   :  { %v226_v17 = vpop.xlane.xlu1 %225  ;;  %503 = vrsqrt.f32 %v204_v16  ;;  %vm207_vm1 = vcmp.eq.f32.partialorder %v204_v16, inf  ;;  %vm209_vm2 = vcmp.eq.f32.partialorder %v204_v16, 0.0  ;;  %v210_v31 = vand.u32 2147483648, %v204_v16 }
  0xc9   :  { %505 = vrsqrt.f32 %v226_v17  ;;  %vm254_vm3 = vcmp.eq.f32.partialorder %v226_v17, inf  ;;  %vm256_vm4 = vcmp.eq.f32.partialorder %v226_v17, 0.0  ;;  %v257_v34 = vand.u32 2147483648, %v226_v17 }
  0xcb   :  { %v223_v19 = vpop.xlane.xlu0 %222 }
  0xcc   :  { %v229_v18 = vpop.xlane.xlu1 %228  ;;  %vm247_vm7 = vcmp.eq.f32.partialorder %v223_v19, inf  ;;  %vm249_vm8 = vcmp.eq.f32.partialorder %v223_v19, 0.0  ;;  %v250_v44 = vand.u32 2147483648, %v223_v19 }
  0xcd   :  { %507 = vrsqrt.f32 %v229_v18  ;;  %vm261_vm5 = vcmp.eq.f32.partialorder %v229_v18, inf  ;;  %vm263_vm6 = vcmp.eq.f32.partialorder %v229_v18, 0.0  ;;  %v264_v41 = vand.u32 2147483648, %v229_v18 }
  0xce   :  { %509 = vrsqrt.f32 %v223_v19 }
  0xcf   :  { %v743_v21 = vpop.xlane.xlu0 %231 }
  0xd0   :  { %v741_v20 = vpop.xlane.xlu1 %234  ;;  %vm268_vm11 = vcmp.eq.f32.partialorder %v743_v21, inf  ;;  %vm270_vm12 = vcmp.eq.f32.partialorder %v743_v21, 0.0 }
  0xd1   :  { %511 = vrsqrt.f32 %v741_v20  ;;  %vm275_vm9 = vcmp.eq.f32.partialorder %v741_v20, inf  ;;  %vm277_vm10 = vcmp.eq.f32.partialorder %v741_v20, 0.0  ;;  %v278_v50 = vand.u32 2147483648, %v741_v20 }
  0xd2   :  { %513 = vrsqrt.f32 %v743_v21  ;;  %v504_v6 = vpop.eup %503 }
  0xd3   :  { %v506_v26 = vpop.eup %505  ;;  %v206_v27 = vmul.f32 %v504_v6, %v204_v16  ;;  %v752_v29 = vpop.xlane.xlu0 %237 }
  0xd4   :  { %v750_v28 = vpop.xlane.xlu1 %240  ;;  %v253_v32 = vmul.f32 %v506_v26, %v226_v17  ;;  %vm282_vm14 = vcmp.eq.f32.partialorder %v752_v29, inf  ;;  %vm284_vm15 = vcmp.eq.f32.partialorder %v752_v29, 0.0  ;;  %v285_v13 = vand.u32 2147483648, %v752_v29 }
  0xd5   :  { %515 = vrsqrt.f32 %v750_v28  ;;  %v208_v33 = vsel %vm207_vm1, %v204_v16, %v206_v27  ;;  %vm289_vm13 = vcmp.eq.f32.partialorder %v750_v28, inf  ;;  %vm291_vm0 = vcmp.eq.f32.partialorder %v750_v28, 0.0 }
  0xd6   :  { %517 = vrsqrt.f32 %v752_v29  ;;  %v211_v36 = vsel %vm209_vm2, %v210_v31, %v208_v33  ;;  %v255_v37 = vsel %vm254_vm3, %v226_v17, %v253_v32 }
  0xd7   :  { %v508_v35 = vpop.eup %507  ;;  %v757_v39 = vadd.f32 1e-06, %v211_v36  ;;  %v759_v42 = vpop.xlane.xlu0 %243  ;;  %v258_v45 = vsel %vm256_vm4, %v257_v34, %v255_v37 }
  0xd8   :  { %v510_v38 = vpop.eup %509  ;;  %v260_v40 = vmul.f32 %v508_v35, %v229_v18  ;;  %519 = vrsqrt.f32 %v759_v42  ;;  %v302_v59 = vadd.f32 1e-06, %v258_v45  ;;  %vm296_vm1 = vcmp.eq.f32.partialorder %v759_v42, inf  ;;  %v167_v31 = vpop.xlane.xlu1 %166 }
  0xd9   :  { %v246_v43 = vmul.f32 %v510_v38, %v223_v19  ;;  %v316_v51 = vrot.slane %v757_v39, %v713_v22  ;;  %v324_v56 = vrot.slane %v757_v39, %v323_v23  ;;  %v320_v60 = vrot.slane %v757_v39, %v319_v25 }
  0xda   :  { %v262_v46 = vsel %vm261_vm5, %v229_v18, %v260_v40  ;;  %v271_v22 = vand.u32 2147483648, %v743_v21  ;;  %v328_v9 = vrot.slane %v757_v39, %v327_v30  ;;  %v292_v18 = vand.u32 2147483648, %v750_v28 }
  0xdb   :  { %v512_v47 = vpop.eup %511  ;;  %v265_v48 = vsel %vm263_vm6, %v264_v41, %v262_v46  ;;  %v248_v49 = vsel %vm247_vm7, %v223_v19, %v246_v43  ;;  %v354_v4 = vmul.f32 %v320_v60, %v302_v59  ;;  %v332_v23 = vrot.slane %v757_v39, %v331_v24  ;;  %v170_v33 = vpop.xlane.xlu0 %169 }
  0xdc   :  { %v514_v52 = vpop.eup %513  ;;  %v251_v53 = vsel %vm249_vm8, %v250_v44, %v248_v49  ;;  %v274_v54 = vmul.f32 %v512_v47, %v741_v20  ;;  %v303_v55 = vadd.f32 1e-06, %v265_v48  ;;  %vm298_vm2 = vcmp.eq.f32.partialorder %v759_v42, 0.0 }
  0xdd   :  { %v267_v57 = vmul.f32 %v514_v52, %v743_v21  ;;  %v301_v58 = vadd.f32 1e-06, %v251_v53  ;;  %v343_v44 = vsub.s32 7, %v700_v3  ;;  %vm444_vm5 = vcmask 1041409  }
  0xde   :  { %v276_v61 = vsel %vm275_vm9, %v741_v20, %v274_v54  ;;  %v355_v2 = vmul.f32 %v324_v56, %v303_v55  ;;  %v335_v20 = vsub.s32 5, %v700_v3  ;;  %vm446_vm6 = vcmask 1042434  }
  0xdf   :  { %v516_v62 = vpop.eup %515  ;;  %v269_v63 = vsel %vm268_vm11, %v743_v21, %v267_v57  ;;  %v353_v1 = vmul.f32 %v316_v51, %v301_v58  ;;  %v279_v7 = vsel %vm277_vm10, %v278_v50, %v276_v61  ;;  %v176_v49 = vpop.xlane.xlu0 %175  ;;  %v344_v50 = vrot.slane %v757_v39, %v343_v44 }
  0xe0   :  { %v518_v5 = vpop.eup %517  ;;  %v272_v8 = vsel %vm270_vm12, %v271_v22, %v269_v63  ;;  %v288_v10 = vmul.f32 %v516_v62, %v750_v28  ;;  %v305_v16 = vadd.f32 1e-06, %v279_v7  ;;  %v336_v32 = vrot.slane %v757_v39, %v335_v20 }
  0xe1   :  { %v281_v11 = vmul.f32 %v518_v5, %v752_v29  ;;  %521 = vrcp.f32 %v353_v1  ;;  %v304_v12 = vadd.f32 1e-06, %v272_v8  ;;  %vm448_vm7 = vcmask 1043459  }
  0xe2   :  { %523 = vrcp.f32 %v354_v4  ;;  %v520_v14 = vpop.eup %519  ;;  %v290_v21 = vsel %vm289_vm13, %v750_v28, %v288_v10  ;;  %v357_v25 = vmul.f32 %v332_v23, %v305_v16  ;;  %v339_v28 = vsub.s32 6, %v700_v3 }
  0xe3   :  { %v283_v15 = vsel %vm282_vm14, %v752_v29, %v281_v11  ;;  %525 = vrcp.f32 %v355_v2  ;;  %v356_v17 = vmul.f32 %v328_v9, %v304_v12  ;;  %v295_v6 = vmul.f32 %v520_v14, %v759_v42  ;;  %v182_v57 = vpop.xlane.xlu0 %181 }
  0xe4   :  { %v286_v19 = vsel %vm284_vm15, %v285_v13, %v283_v15  ;;  %v293_v27 = vsel %vm291_vm0, %v292_v18, %v290_v21  ;;  %v299_v29 = vand.u32 2147483648, %v759_v42  ;;  %v340_v41 = vrot.slane %v757_v39, %v339_v28 }
  0xe5   :  { %527 = vrcp.f32 %v356_v17  ;;  %v306_v26 = vadd.f32 1e-06, %v286_v19  ;;  %v297_v30 = vsel %vm296_vm1, %v759_v42, %v295_v6  ;;  %v307_v24 = vadd.f32 1e-06, %v293_v27  ;;  %v173_v42 = vpop.xlane.xlu1 %172 }
  0xe6   :  { %529 = vrcp.f32 %v357_v25  ;;  %v300_v37 = vsel %vm298_vm2, %v299_v29, %v297_v30  ;;  %v411_v14 = vand.u32 127, %v72_v0  ;;  %vm450_vm8 = vcmask 1044484  }
  0xe7   :  { %v358_v35 = vmul.f32 %v336_v32, %v306_v26  ;;  %v359_v45 = vmul.f32 %v340_v41, %v307_v24  ;;  %v308_v46 = vadd.f32 1e-06, %v300_v37  ;;  %v188_v62 = vpop.xlane.xlu0 %187  ;;  %vm452_vm9 = vcmask 1045509  }
  0xe8   :  { %v414_v17 = vsub.s32 %v411_v14, %v700_v3  ;;  %vm454_vm10 = vcmask 1046534   ;;  %vm456_vm11 = vcmask 1047559   ;;  %vm461_vm12 = vcmask 64512  }
  0xe9   :  { %531 = vrcp.f32 %v358_v35  ;;  %v360_v51 = vmul.f32 %v344_v50, %v308_v46  ;;  %v179_v54 = vpop.xlane.xlu1 %178 }
  0xea   :  { %533 = vrcp.f32 %v359_v45 }
  0xeb   :  { %v522_v34 = vpop.eup %521  ;;  %535 = vrcp.f32 %v360_v51  ;;  %v66_v15 = vpop.xlane.xlu0 %65 }
  0xec   :  { %v524_v36 = vpop.eup %523  ;;  %v369_v38 = vmul.f32 %v522_v34, %v167_v31 }
  0xed   :  { %v526_v40 = vpop.eup %525  ;;  %v370_v43 = vmul.f32 %v524_v36, %v170_v33  ;;  %v185_v60 = vpop.xlane.xlu1 %184 }
  0xee   :  { %387 = vperm.xlu1 %500, %v369_v38   ;;  %v371_v47 = vmul.f32 %v526_v40, %v173_v42 }
  0xef   :  { %390 = vperm.xlu0 %501, %v370_v43   ;;  %v528_v48 = vpop.eup %527 }
  0xf0   :  { %v372_v52 = vmul.f32 %v528_v48, %v176_v49  ;;  %v530_v53 = vpop.eup %529 }
  0xf1   :  { %v373_v55 = vmul.f32 %v530_v53, %v179_v54  ;;  %v192_v1 = vpop.xlane.xlu1 %191 }
  0xf2   :  { %393 = vperm.xlu1 %500, %v371_v47   ;;  %537 = vrsqrt.f32 %v192_v1  ;;  %vm195_vm3 = vcmp.eq.f32.partialorder %v192_v1, inf  ;;  %v198_v5 = vand.u32 2147483648, %v192_v1  ;;  %vm197_vm4 = vcmp.eq.f32.partialorder %v192_v1, 0.0 }
  0xf3   :  { %v532_v56 = vpop.eup %531 }
  0xf4   :  { %v374_v58 = vmul.f32 %v532_v56, %v182_v57  ;;  %v534_v59 = vpop.eup %533 }
  0xf5   :  { %v375_v61 = vmul.f32 %v534_v59, %v185_v60  ;;  %v536_v22 = vpop.eup %535 }
  0xf6   :  { %396 = vperm.xlu1 %500, %v372_v52   ;;  %v376_v63 = vmul.f32 %v536_v22, %v188_v62 }
  0xfa   :  { %399 = vperm.xlu1 %500, %v373_v55  }
  0xfc   :  { %v538_v2 = vpop.eup %537 }
  0xfd   :  { %v194_v4 = vmul.f32 %v538_v2, %v192_v1 }
  0xfe   :  { %402 = vperm.xlu1 %500, %v374_v58  }
  0xff   :  { %v196_v7 = vsel %vm195_vm3, %v192_v1, %v194_v4 }
 0x100   :  { %v199_v8 = vsel %vm197_vm4, %v198_v5, %v196_v7 }
 0x101   :  { %v200_v10 = vadd.f32 1e-06, %v199_v8 }
 0x102   :  { %405 = vperm.xlu1 %500, %v375_v61  }
 0x103   :  { %v309_v12 = vmul.f32 %v757_v39, %v200_v10 }
 0x105   :  { %539 = vrcp.f32 %v309_v12 }
 0x106   :  { %408 = vperm.xlu1 %500, %v376_v63  }
 0x10f   :  { %v540_v6 = vpop.eup %539 }
 0x110   :  { %v311_v0 = vmul.f32 %v540_v6, %v66_v15 }
 0x112   :  { %v377_v24 = vsub.f32 1.0, %v311_v0 }
 0x16d   :  { %v388_v9 = vpop.permute.xlu1 %387 }
 0x16e   :  { %v391_v18 = vpop.permute.xlu0 %390  ;;  %v415_v20 = vrot.slane %v388_v9, %v414_v17 }
 0x16f   :  { %v419_v23 = vrot.slane %v391_v18, %v414_v17 }
 0x171   :  { %v394_v11 = vpop.permute.xlu1 %393  ;;  %v445_v27 = vsel %vm444_vm5, %v419_v23, %v415_v20 }
 0x172   :  { %v423_v21 = vrot.slane %v394_v11, %v414_v17 }
 0x174   :  { %v447_v30 = vsel %vm446_vm6, %v423_v21, %v445_v27 }
 0x175   :  { %v397_v13 = vpop.permute.xlu1 %396 }
 0x176   :  { %v427_v25 = vrot.slane %v397_v13, %v414_v17 }
 0x178   :  { %v449_v3 = vsel %vm448_vm7, %v427_v25, %v447_v30 }
 0x179   :  { %v400_v16 = vpop.permute.xlu1 %399 }
 0x17a   :  { %v431_v26 = vrot.slane %v400_v16, %v414_v17 }
 0x17c   :  { %v451_v28 = vsel %vm450_vm8, %v431_v26, %v449_v3 }
 0x17d   :  { %v403_v19 = vpop.permute.xlu1 %402 }
 0x17e   :  { %v435_v29 = vrot.slane %v403_v19, %v414_v17 }
 0x180   :  { %v453_v33 = vsel %vm452_vm9, %v435_v29, %v451_v28 }
 0x181   :  { %v406_v39 = vpop.permute.xlu1 %405 }
 0x182   :  { %v439_v31 = vrot.slane %v406_v39, %v414_v17 }
 0x184   :  { %v455_v35 = vsel %vm454_vm10, %v439_v31, %v453_v33 }
 0x185   :  { %v409_v32 = vpop.permute.xlu1 %408 }
 0x186   :  { %v443_v34 = vrot.slane %v409_v32, %v414_v17 }
 0x188   :  { %v457_v36 = vsel %vm456_vm11, %v443_v34, %v455_v35 }
 0x189   :  { %v459_v37 = vadd.f32 %v457_v36, %v377_v24 }
 0x18b   :  { %v460_v38 = vmax.f32 %v459_v37, 0.0 }
 0x18d   :  { %v462_v40 = vsel %vm461_vm12, %v460_v38, 0.0 }
 0x18e   :  { %463 = vadd.xlane.f32.xlu1 %v462_v40 }
 0x21b   :  { %v464_v41 = vpop.xlane.xlu1 %463 }
 0x21c   :  { %v465_v43 = vrot.slane %v464_v41, 4 }
 0x21e   :  { %v466_v44 = vadd.f32 %v465_v43, %v464_v41 }
 0x220   :  { %v467_v42 = vrot.slane %v466_v44, 2 }
 0x222   :  { %v468_v45 = vadd.f32 %v467_v42, %v466_v44 }
 0x224   :  { %v469_v46 = vrot.slane %v468_v45, 1 }
 0x226   :  { %v470_v47 = vadd.f32 %v469_v46, %v468_v45 }
 0x228   :  { %490 = vpush %v470_v47 }
 0x259   :  { %s491_s22 = spop %490 }
 0x25a   :  { %v472_v48 = vstv %s491_s22 }
 0x25b   :  { %473 = vst [vmem:[#allocation8] sm:$0xff] %v472_v48 }
 0x25c   :  { %618 = shalt.err (!%p615_p0)
}
 0x25d   :  { %s619_s26 = scalar_lea.hbm %s827_s3, 128 }
 0x25e   :  { %p620_p1 = scmp.ne.s32.totalorder %s827_s3, %s619_s26  ;;  %p623_p2 = scmp.lt.u32.totalorder %s619_s26, %s827_s3 }
 0x260   :  { %p625_p3 = pnand %p623_p2, %p620_p1 }
 0x262   :  { %628 = shalt.err (!%p625_p3)
}
 0x263   :  { %483 = dma.vmem_to_hbm [thread:$0]  %s481_s21, 128, %s827_s3, [#allocation4]  }
 0x264   :  { %633 = dma.done.wait [#allocation4], 128  }
 0x265   :  { %634 = vsyncadd [#allocation4], 4294967168 }
 0x266   :  { %487 = vsyncpa [#allocation3], 1 }
 0x267   :  { %488 = vsyncpa [#allocation6], 1 }
 0x268   :  { %489 = vsyncpa [#allocation4], 1 }

</bundles_post_ra>
